<compile_context>
chip_gen: v7x
topology: tpu7x:2x2x1
jax: 0.10.0
libtpu: 0.0.40
codegen_flags: <defaults>
</compile_context>

<pallas_src>
import math

import jax
import jax.numpy as jnp
from jax.experimental import pallas as pl
from jax.experimental.pallas import tpu as pltpu

# Small, deterministic problem sizes implied by the forward:
B = 2    # batch
L = 8    # Markov-chain length (spatial axis of the 1-D convs)
C = 4    # features / channels
H = 32   # hidden channels of the score net
K = 3    # conv kernel size (padding = 1, "same")
E = 16   # sinusoidal time-embedding width


def _fused_score_kernel(x_ref, emb_ref, we1_ref, be1_ref, we2_ref, be2_ref,
                        w1_ref, b1_ref, w2_ref, b2_ref, o_ref):
    """Fused score net over the whole batch, single invocation.

    x_ref  : (B*L, C)   channels-last input, batch/chain flattened (row = b*L+l)
    emb_ref: (B, E)     sinusoidal time embedding
    we1_ref: (E, H), be1_ref: (1, H), we2_ref: (H, H), be2_ref: (1, H)
    w1_ref : (K*C, H)   conv1 weights, tap-major rows
    b1_ref : (1, H)
    w2_ref : (K*H, C)   conv2 weights, tap-major rows
    b2_ref : (1, C)
    o_ref  : (B*L, C)   output
    """
    x = x_ref[...]                                               # (B*L, C) f32

    # ---- time-embedding MLP, fused (tiny matmuls ride in MXU slack) ----
    t1 = jnp.dot(emb_ref[...], we1_ref[...],
                 preferred_element_type=jnp.float32) + be1_ref[...]
    t1 = t1 * jax.nn.sigmoid(t1)                                 # SiLU
    temb = jnp.dot(t1, we2_ref[...],
                   preferred_element_type=jnp.float32) + be2_ref[...]   # (B, H)
    # Broadcast over the chain axis: rows [b*L, (b+1)*L) get temb[b].
    temb_rows = jnp.concatenate(
        [jnp.broadcast_to(temb[b:b + 1, :], (L, H)) for b in range(B)],
        axis=0)                                                  # (B*L, H)

    # ---- conv1 ("same", k=3) as a single im2col matmul ----
    # Shifted copies built in-register; batch boundaries zeroed by the l-mask.
    l_ids = jax.lax.broadcasted_iota(jnp.int32, x.shape, 0) % L
    zc = jnp.zeros((1, x.shape[1]), x.dtype)
    x_prev = jnp.where(l_ids == 0, 0.0,
                       jnp.concatenate([zc, x[:-1, :]], axis=0))
    x_next = jnp.where(l_ids == L - 1, 0.0,
                       jnp.concatenate([x[1:, :], zc], axis=0))
    xwin = jnp.concatenate([x_prev, x, x_next], axis=-1)         # (B*L, K*C)
    h = jnp.dot(xwin, w1_ref[...], preferred_element_type=jnp.float32)
    h = h + b1_ref[...] + temb_rows
    h = h * jax.nn.sigmoid(h)                                    # SiLU, (B*L, H)

    # ---- conv2 ("same", k=3) as a single im2col matmul ----
    lh_ids = jax.lax.broadcasted_iota(jnp.int32, h.shape, 0) % L
    zh = jnp.zeros((1, h.shape[1]), h.dtype)
    h_prev = jnp.where(lh_ids == 0, 0.0,
                       jnp.concatenate([zh, h[:-1, :]], axis=0))
    h_next = jnp.where(lh_ids == L - 1, 0.0,
                       jnp.concatenate([h[1:, :], zh], axis=0))
    hwin = jnp.concatenate([h_prev, h, h_next], axis=-1)         # (B*L, K*H)
    y = jnp.dot(hwin, w2_ref[...],
                preferred_element_type=jnp.float32) + b2_ref[...]
    o_ref[...] = y.astype(o_ref.dtype)


def _score_conv_pallas(x_nlc, emb, params):
    """One fused Pallas call: temb MLP + conv1 + SiLU + conv2, whole batch."""
    w1mat = params["w1"].reshape(K * C, H)      # tap-major rows: k = 0, 1, 2
    w2mat = params["w2"].reshape(K * H, C)
    x_flat = x_nlc.reshape(B * L, C)

    vmem = lambda: pl.BlockSpec(memory_space=pltpu.MemorySpace.VMEM)
    y_flat = pl.pallas_call(
        _fused_score_kernel,
        out_shape=jax.ShapeDtypeStruct((B * L, C), x_nlc.dtype),
        in_specs=[vmem() for _ in range(10)],
        out_specs=vmem(),
    )(x_flat, emb,
      params["we1"], params["be1"].reshape(1, H),
      params["we2"], params["be2"].reshape(1, H),
      w1mat, params["b1"], w2mat, params["b2"])
    return y_flat.reshape(B, L, C)


def _time_embedding(t):
    """Sinusoidal embedding of t, shape (B, E).  Tiny; stays in XLA."""
    half = E // 2
    freqs = jnp.exp(-math.log(1e4) * jnp.arange(half, dtype=jnp.float32) / half)
    ang = t[:, None] * freqs[None, :]
    return jnp.concatenate([jnp.sin(ang), jnp.cos(ang)], axis=-1)


def score_forward(x_ncl, t, params):
    """The wrapped score network. Input/output layout: NCL = (B, C, L)."""
    emb = _time_embedding(t)                        # (B, E)
    # layout: kernel works channels-last; convert NCL -> NLC here.
    x_nlc = jnp.swapaxes(x_ncl, 1, 2)
    y_nlc = _score_conv_pallas(x_nlc, emb, params)
    return jnp.swapaxes(y_nlc, 1, 2)                # back to NCL


def mc_score_wrapper(x, t, params):
    """MCScoreWrapper.forward: score(x.transpose(1, 2), t).transpose(1, 2)."""
    return jnp.swapaxes(score_forward(jnp.swapaxes(x, 1, 2), t, params), 1, 2)


def _reference_forward(x, t, params):
    """Pure-JAX reference of the exact same computation, for verification."""
    x_ncl = jnp.swapaxes(x, 1, 2)
    emb = _time_embedding(t)
    temb = jax.nn.silu(emb @ params["we1"] + params["be1"])
    temb = temb @ params["we2"] + params["be2"]

    x_nlc = jnp.swapaxes(x_ncl, 1, 2)
    xp = jnp.pad(x_nlc, ((0, 0), (1, 1), (0, 0)))
    h = sum(jnp.einsum("blc,ch->blh", xp[:, k:k + L, :], params["w1"][k])
            for k in range(K))
    h = h + params["b1"][None] + temb[:, None, :]
    h = jax.nn.silu(h)
    hp = jnp.pad(h, ((0, 0), (1, 1), (0, 0)))
    y = sum(jnp.einsum("blh,hc->blc", hp[:, k:k + L, :], params["w2"][k])
            for k in range(K))
    y = y + params["b2"][None]
    return jnp.swapaxes(jnp.swapaxes(y, 1, 2), 1, 2)


if __name__ == "__main__":
    key = jax.random.PRNGKey(0)
    ks = jax.random.split(key, 8)

    params = {
        "w1":  jax.random.normal(ks[0], (K, C, H), jnp.float32) * 0.3,
        "b1":  jax.random.normal(ks[1], (1, H), jnp.float32) * 0.1,
        "w2":  jax.random.normal(ks[2], (K, H, C), jnp.float32) * 0.2,
        "b2":  jax.random.normal(ks[3], (1, C), jnp.float32) * 0.1,
        "we1": jax.random.normal(ks[4], (E, H), jnp.float32) * 0.3,
        "be1": jnp.zeros((H,), jnp.float32),
        "we2": jax.random.normal(ks[5], (H, H), jnp.float32) * 0.2,
        "be2": jnp.zeros((H,), jnp.float32),
    }

    x = jax.random.normal(ks[6], (B, L, C), jnp.float32)  # (batch, chain, feat)
    t = jax.random.uniform(ks[7], (B,), jnp.float32)

    y = mc_score_wrapper(x, t, params)
    y = jax.block_until_ready(y)

    y_ref = jax.block_until_ready(_reference_forward(x, t, params))
    assert y.shape == (B, L, C)
    assert jnp.allclose(y, y_ref, atol=5e-4, rtol=5e-4), "Pallas/ref mismatch"

    print("KERNEL_OK")
</pallas_src>

<mosaic_0001>
module attributes {stable_mosaic.version = 11 : i64} {
  func.func @_fused_score_kernel(%arg0: memref<16x4xf32, #tpu.memory_space<vmem>>, %arg1: memref<2x16xf32, #tpu.memory_space<vmem>>, %arg2: memref<16x32xf32, #tpu.memory_space<vmem>>, %arg3: memref<1x32xf32, #tpu.memory_space<vmem>>, %arg4: memref<32x32xf32, #tpu.memory_space<vmem>>, %arg5: memref<1x32xf32, #tpu.memory_space<vmem>>, %arg6: memref<12x32xf32, #tpu.memory_space<vmem>>, %arg7: memref<1x32xf32, #tpu.memory_space<vmem>>, %arg8: memref<96x4xf32, #tpu.memory_space<vmem>>, %arg9: memref<1x4xf32, #tpu.memory_space<vmem>>, %arg10: memref<16x4xf32, #tpu.memory_space<vmem>>) attributes {dimension_semantics = [], scalar_prefetch = 0 : i64, scratch_operands = 0 : i64, tpu.core_type = #tpu.core_type<tc>} {
    %c0 = arith.constant 0 : index
    %c0_0 = arith.constant 0 : index
    %0 = vector.load %arg0[%c0, %c0_0] : memref<16x4xf32, #tpu.memory_space<vmem>>, vector<16x4xf32>
    %c0_1 = arith.constant 0 : index
    %c0_2 = arith.constant 0 : index
    %1 = vector.load %arg1[%c0_1, %c0_2] : memref<2x16xf32, #tpu.memory_space<vmem>>, vector<2x16xf32>
    %c0_3 = arith.constant 0 : index
    %c0_4 = arith.constant 0 : index
    %2 = vector.load %arg2[%c0_3, %c0_4] : memref<16x32xf32, #tpu.memory_space<vmem>>, vector<16x32xf32>
    %cst = arith.constant dense<0.000000e+00> : vector<2x32xf32>
    %3 = tpu.matmul %1, %2, %cst {dimension_numbers = #tpu.dot_dimension_numbers<[1], [0], [0], [1], [0, 0, 1, 1], [], []>} : vector<2x16xf32>, vector<16x32xf32>, vector<2x32xf32> -> vector<2x32xf32>
    %c0_5 = arith.constant 0 : index
    %c0_6 = arith.constant 0 : index
    %4 = vector.load %arg3[%c0_5, %c0_6] : memref<1x32xf32, #tpu.memory_space<vmem>>, vector<1x32xf32>
    %5 = vector.broadcast %4 : vector<1x32xf32> to vector<2x32xf32>
    %6 = arith.addf %3, %5 : vector<2x32xf32>
    %7 = arith.negf %6 : vector<2x32xf32>
    %8 = math.exp %7 : vector<2x32xf32>
    %cst_7 = arith.constant 1.000000e+00 : f32
    %9 = vector.broadcast %cst_7 : f32 to vector<2x32xf32>
    %10 = arith.addf %9, %8 : vector<2x32xf32>
    %11 = arith.divf %9, %10 : vector<2x32xf32>
    %12 = arith.mulf %6, %11 : vector<2x32xf32>
    %c0_8 = arith.constant 0 : index
    %c0_9 = arith.constant 0 : index
    %13 = vector.load %arg4[%c0_8, %c0_9] : memref<32x32xf32, #tpu.memory_space<vmem>>, vector<32x32xf32>
    %cst_10 = arith.constant dense<0.000000e+00> : vector<2x32xf32>
    %14 = tpu.matmul %12, %13, %cst_10 {dimension_numbers = #tpu.dot_dimension_numbers<[1], [0], [0], [1], [0, 0, 1, 1], [], []>} : vector<2x32xf32>, vector<32x32xf32>, vector<2x32xf32> -> vector<2x32xf32>
    %c0_11 = arith.constant 0 : index
    %c0_12 = arith.constant 0 : index
    %15 = vector.load %arg5[%c0_11, %c0_12] : memref<1x32xf32, #tpu.memory_space<vmem>>, vector<1x32xf32>
    %16 = vector.broadcast %15 : vector<1x32xf32> to vector<2x32xf32>
    %17 = arith.addf %14, %16 : vector<2x32xf32>
    %18 = vector.extract_strided_slice %17 {offsets = [0, 0], sizes = [1, 32], strides = [1, 1]} : vector<2x32xf32> to vector<1x32xf32>
    %19 = vector.shape_cast %18 : vector<1x32xf32> to vector<1x32xf32>
    %20 = vector.broadcast %19 : vector<1x32xf32> to vector<8x32xf32>
    %21 = vector.extract_strided_slice %17 {offsets = [1, 0], sizes = [1, 32], strides = [1, 1]} : vector<2x32xf32> to vector<1x32xf32>
    %22 = vector.shape_cast %21 : vector<1x32xf32> to vector<1x32xf32>
    %23 = vector.broadcast %22 : vector<1x32xf32> to vector<8x32xf32>
    %24 = tpu.concatenate %20, %23 in 0 : vector<8x32xf32>, vector<8x32xf32> -> vector<16x32xf32>
    %25 = tpu.iota {dimensions = array<i32: 0>} : vector<16x4xi32>
    %c8_i32 = arith.constant 8 : i32
    %c0_i32 = arith.constant 0 : i32
    %26 = arith.cmpi eq, %c8_i32, %c0_i32 : i32
    %c1_i32 = arith.constant 1 : i32
    %27 = arith.select %26, %c1_i32, %c8_i32 : i32
    %28 = vector.broadcast %27 : i32 to vector<16x4xi32>
    %29 = arith.remsi %25, %28 : vector<16x4xi32>
    %c0_i32_13 = arith.constant 0 : i32
    %30 = vector.broadcast %c0_i32_13 : i32 to vector<16x4xi32>
    %31 = arith.cmpi ne, %29, %30 : vector<16x4xi32>
    %c0_i32_14 = arith.constant 0 : i32
    %32 = vector.broadcast %c0_i32_14 : i32 to vector<16x4xi32>
    %33 = arith.cmpi slt, %29, %32 : vector<16x4xi32>
    %c0_i32_15 = arith.constant 0 : i32
    %34 = arith.cmpi slt, %27, %c0_i32_15 : i32
    %35 = vector.broadcast %34 : i1 to vector<16x4xi1>
    %36 = vector.broadcast %35 : vector<16x4xi1> to vector<16x4xi1>
    %37 = arith.xori %33, %36 : vector<16x4xi1>
    %38 = arith.andi %37, %31 : vector<16x4xi1>
    %39 = vector.broadcast %27 : i32 to vector<16x4xi32>
    %40 = arith.addi %29, %39 : vector<16x4xi32>
    %41 = arith.select %38, %40, %29 : vector<16x4xi1>, vector<16x4xi32>
    %cst_16 = arith.constant 0.000000e+00 : f32
    %42 = vector.broadcast %cst_16 : f32 to vector<1x4xf32>
    %c0_i32_17 = arith.constant 0 : i32
    %43 = vector.broadcast %c0_i32_17 : i32 to vector<16x4xi32>
    %44 = arith.cmpi eq, %41, %43 : vector<16x4xi32>
    %45 = vector.extract_strided_slice %0 {offsets = [0, 0], sizes = [15, 4], strides = [1, 1]} : vector<16x4xf32> to vector<15x4xf32>
    %46 = tpu.concatenate %42, %45 in 0 : vector<1x4xf32>, vector<15x4xf32> -> vector<16x4xf32>
    %cst_18 = arith.constant 0.000000e+00 : f32
    %47 = vector.broadcast %cst_18 : f32 to vector<16x4xf32>
    %48 = arith.select %44, %47, %46 : vector<16x4xi1>, vector<16x4xf32>
    %c7_i32 = arith.constant 7 : i32
    %49 = vector.broadcast %c7_i32 : i32 to vector<16x4xi32>
    %50 = arith.cmpi eq, %41, %49 : vector<16x4xi32>
    %51 = vector.extract_strided_slice %0 {offsets = [1, 0], sizes = [15, 4], strides = [1, 1]} : vector<16x4xf32> to vector<15x4xf32>
    %52 = tpu.concatenate %51, %42 in 0 : vector<15x4xf32>, vector<1x4xf32> -> vector<16x4xf32>
    %cst_19 = arith.constant 0.000000e+00 : f32
    %53 = vector.broadcast %cst_19 : f32 to vector<16x4xf32>
    %54 = arith.select %50, %53, %52 : vector<16x4xi1>, vector<16x4xf32>
    %55 = tpu.concatenate %48, %0, %54 in 1 : vector<16x4xf32>, vector<16x4xf32>, vector<16x4xf32> -> vector<16x12xf32>
    %c0_20 = arith.constant 0 : index
    %c0_21 = arith.constant 0 : index
    %56 = vector.load %arg6[%c0_20, %c0_21] : memref<12x32xf32, #tpu.memory_space<vmem>>, vector<12x32xf32>
    %cst_22 = arith.constant dense<0.000000e+00> : vector<16x32xf32>
    %57 = tpu.matmul %55, %56, %cst_22 {dimension_numbers = #tpu.dot_dimension_numbers<[1], [0], [0], [1], [0, 0, 1, 1], [], []>} : vector<16x12xf32>, vector<12x32xf32>, vector<16x32xf32> -> vector<16x32xf32>
    %c0_23 = arith.constant 0 : index
    %c0_24 = arith.constant 0 : index
    %58 = vector.load %arg7[%c0_23, %c0_24] : memref<1x32xf32, #tpu.memory_space<vmem>>, vector<1x32xf32>
    %59 = vector.broadcast %58 : vector<1x32xf32> to vector<16x32xf32>
    %60 = arith.addf %57, %59 : vector<16x32xf32>
    %61 = arith.addf %60, %24 : vector<16x32xf32>
    %62 = arith.negf %61 : vector<16x32xf32>
    %63 = math.exp %62 : vector<16x32xf32>
    %cst_25 = arith.constant 1.000000e+00 : f32
    %64 = vector.broadcast %cst_25 : f32 to vector<16x32xf32>
    %65 = arith.addf %64, %63 : vector<16x32xf32>
    %66 = arith.divf %64, %65 : vector<16x32xf32>
    %67 = arith.mulf %61, %66 : vector<16x32xf32>
    %68 = tpu.iota {dimensions = array<i32: 0>} : vector<16x32xi32>
    %c8_i32_26 = arith.constant 8 : i32
    %c0_i32_27 = arith.constant 0 : i32
    %69 = arith.cmpi eq, %c8_i32_26, %c0_i32_27 : i32
    %c1_i32_28 = arith.constant 1 : i32
    %70 = arith.select %69, %c1_i32_28, %c8_i32_26 : i32
    %71 = vector.broadcast %70 : i32 to vector<16x32xi32>
    %72 = arith.remsi %68, %71 : vector<16x32xi32>
    %c0_i32_29 = arith.constant 0 : i32
    %73 = vector.broadcast %c0_i32_29 : i32 to vector<16x32xi32>
    %74 = arith.cmpi ne, %72, %73 : vector<16x32xi32>
    %c0_i32_30 = arith.constant 0 : i32
    %75 = vector.broadcast %c0_i32_30 : i32 to vector<16x32xi32>
    %76 = arith.cmpi slt, %72, %75 : vector<16x32xi32>
    %c0_i32_31 = arith.constant 0 : i32
    %77 = arith.cmpi slt, %70, %c0_i32_31 : i32
    %78 = vector.broadcast %77 : i1 to vector<16x32xi1>
    %79 = vector.broadcast %78 : vector<16x32xi1> to vector<16x32xi1>
    %80 = arith.xori %76, %79 : vector<16x32xi1>
    %81 = arith.andi %80, %74 : vector<16x32xi1>
    %82 = vector.broadcast %70 : i32 to vector<16x32xi32>
    %83 = arith.addi %72, %82 : vector<16x32xi32>
    %84 = arith.select %81, %83, %72 : vector<16x32xi1>, vector<16x32xi32>
    %cst_32 = arith.constant 0.000000e+00 : f32
    %85 = vector.broadcast %cst_32 : f32 to vector<1x32xf32>
    %c0_i32_33 = arith.constant 0 : i32
    %86 = vector.broadcast %c0_i32_33 : i32 to vector<16x32xi32>
    %87 = arith.cmpi eq, %84, %86 : vector<16x32xi32>
    %88 = vector.extract_strided_slice %67 {offsets = [0, 0], sizes = [15, 32], strides = [1, 1]} : vector<16x32xf32> to vector<15x32xf32>
    %89 = tpu.concatenate %85, %88 in 0 : vector<1x32xf32>, vector<15x32xf32> -> vector<16x32xf32>
    %cst_34 = arith.constant 0.000000e+00 : f32
    %90 = vector.broadcast %cst_34 : f32 to vector<16x32xf32>
    %91 = arith.select %87, %90, %89 : vector<16x32xi1>, vector<16x32xf32>
    %c7_i32_35 = arith.constant 7 : i32
    %92 = vector.broadcast %c7_i32_35 : i32 to vector<16x32xi32>
    %93 = arith.cmpi eq, %84, %92 : vector<16x32xi32>
    %94 = vector.extract_strided_slice %67 {offsets = [1, 0], sizes = [15, 32], strides = [1, 1]} : vector<16x32xf32> to vector<15x32xf32>
    %95 = tpu.concatenate %94, %85 in 0 : vector<15x32xf32>, vector<1x32xf32> -> vector<16x32xf32>
    %cst_36 = arith.constant 0.000000e+00 : f32
    %96 = vector.broadcast %cst_36 : f32 to vector<16x32xf32>
    %97 = arith.select %93, %96, %95 : vector<16x32xi1>, vector<16x32xf32>
    %98 = tpu.concatenate %91, %67, %97 in 1 : vector<16x32xf32>, vector<16x32xf32>, vector<16x32xf32> -> vector<16x96xf32>
    %c0_37 = arith.constant 0 : index
    %c0_38 = arith.constant 0 : index
    %99 = vector.load %arg8[%c0_37, %c0_38] : memref<96x4xf32, #tpu.memory_space<vmem>>, vector<96x4xf32>
    %cst_39 = arith.constant dense<0.000000e+00> : vector<16x4xf32>
    %100 = tpu.matmul %98, %99, %cst_39 {dimension_numbers = #tpu.dot_dimension_numbers<[1], [0], [0], [1], [0, 0, 1, 1], [], []>} : vector<16x96xf32>, vector<96x4xf32>, vector<16x4xf32> -> vector<16x4xf32>
    %c0_40 = arith.constant 0 : index
    %c0_41 = arith.constant 0 : index
    %101 = vector.load %arg9[%c0_40, %c0_41] : memref<1x4xf32, #tpu.memory_space<vmem>>, vector<1x4xf32>
    %102 = vector.broadcast %101 : vector<1x4xf32> to vector<16x4xf32>
    %103 = arith.addf %100, %102 : vector<16x4xf32>
    %c0_42 = arith.constant 0 : index
    %c0_43 = arith.constant 0 : index
    %104 = vector.load %arg10[%c0_42, %c0_43] : memref<16x4xf32, #tpu.memory_space<vmem>>, vector<16x4xf32>
    tpu.vector_store %arg10[%c0_42, %c0_43], %103 {strides = array<i32>} : memref<16x4xf32, #tpu.memory_space<vmem>>, vector<16x4xf32>,
    return
  }
}

</mosaic_0001>

<bundles_post_ra>
// kernel: tpu_custom_call.1
= control target key start
LH: loop header
LB: loop body
LE: loop exit
PB: predicated region body
PF: predicated region fallthrough
CT: control target
= control target key end

     0   :  { %v698_v0 = vmov 0.0|0.0   ;;  %vm699_vm0 = vmmov 0   ;;  %v700_v3 = vmov 0.0   ;;  %v213_v4 = vlaneseq  ;;  %s701_s21 = smov 4   ;;  %s911_s2 = inlined_call_operand.vmem [shape: f32[16,32], index: 2, kind: input, shape index: {}]   ;;  %s912_s0 = inlined_call_operand.vmem [shape: f32[16,4], index: 0, kind: input, shape index: {}]   ;;  %s913_s1 = inlined_call_operand.vmem [shape: f32[2,16], index: 1, kind: input, shape index: {}]   ;;  %s914_s4 = inlined_call_operand.vmem [shape: f32[32,32], index: 4, kind: input, shape index: {}]   ;;  %s915_s6 = inlined_call_operand.vmem [shape: f32[12,32], index: 6, kind: input, shape index: {}]   ;;  %s916_s3 = inlined_call_operand.vmem [shape: f32[1,32], index: 3, kind: input, shape index: {}]   ;;  %s917_s8 = inlined_call_operand.vmem [shape: f32[96,4], index: 8, kind: input, shape index: {}]   ;;  %s918_s5 = inlined_call_operand.vmem [shape: f32[1,32], index: 5, kind: input, shape index: {}]   ;;  %s919_s7 = inlined_call_operand.vmem [shape: f32[1,32], index: 7, kind: input, shape index: {}]   ;;  %s920_s9 = inlined_call_operand.vmem [shape: f32[1,4], index: 9, kind: input, shape index: {}]   ;;  %s921_s10 = inlined_call_operand.vmem [shape: f32[16,4], index: 10, kind: output, shape index: {}]  }
   0x1   :  { %639 = vmatprep.subr.bf16.mxu1 %v698_v0  ;;  %v38_v1 = vld [vmem:[%s911_s2] sm:$0xff]  ;;  %v39_v2 = vld [vmem:[%s911_s2 + $0x8] sm:$0xff]  ;;  %591 = vmatprep.mubr.msk.f32.mxu1 %vm699_vm0, %v700_v3  ;;  %vm263_vm1 = vcmask 1046528   ;;  %vm47_vm2 = vcmask 130048   ;;  %v130_v24 = vld [vmem:[%s914_s4 + $0x10] sm:$0xff]  ;;  %vm308_vm5 = vcmask 1043456  }
   0x2   :  { %v640_v5 = vpack.c.bf16 %v39_v2, %v38_v1  ;;  %v35_v6 = vld [vmem:[%s912_s0] sm:$0xff]  ;;  %v36_v7 = vld [vmem:[%s912_s0 + $0x8] sm:$0xff]  ;;  %v774_v9 = vshrl.u32 %v213_v4, 7  ;;  %s702_s0 = smov 8   ;;  %v131_v25 = vld [vmem:[%s914_s4 + $0x18] sm:$0xff]  ;;  %vm252_vm6 = vcmask 1040384  }
   0x3   :  { %272 = vrot.lane.b32.xlu0 %v35_v6, %s701_s21  ;;  %v264_v8 = vrot.slane %v35_v6, 1  ;;  %v37_v10 = vld [vmem:[%s913_s1] sm:$0x3]  ;;  %v265_v11 = vrot.slane %v36_v7, 1  ;;  %v129_v22 = vld [vmem:[%s914_s4 + $0x8] sm:$0xff]  ;;  %v646_v26 = vpack.c.bf16 %v131_v25, %v130_v24  ;;  %v254_v27 = vrot.slane %v36_v7, 7 }
   0x4   :  { %641 = vmatpush3.bf16.msra.mxu1 %v640_v5  ;;  %v228_v12 = vand.u32 7, %v774_v9  ;;  %v223_v13 = vadd.s32 8, %v774_v9  ;;  %v128_v21 = vld [vmem:[%s914_s4] sm:$0xff]  ;;  %v293_v29 = vld [vmem:[%s915_s6 + $0x8] sm:$0xf]  ;;  %v253_v30 = vrot.slane %v35_v6, 7 }
   0x5   :  { %642 = vmatprep.subr.bf16.mxu1 %v698_v0  ;;  %v266_v14 = vsel %vm263_vm1, %v264_v8, %v265_v11  ;;  %v269_v17 = vsel %vm263_vm1, %v265_v11, 0.0  ;;  %v643_v23 = vpack.c.bf16 %v129_v22, %v128_v21  ;;  %v292_v28 = vld [vmem:[%s915_s6] sm:$0xff]  ;;  %vm703_vm7 = vmmov 1   ;;  %v441_v57 = vld [vmem:[%s917_s8 + $0x8] sm:$0xff]  ;;  %v442_v58 = vld [vmem:[%s917_s8 + $0x10] sm:$0xff] }
   0x6   :  { %vm782_vm3 = vcmp.eq.s32.totalorder %v228_v12, 7  ;;  %v235_v16 = vand.u32 7, %v223_v13  ;;  %v648_v31 = vpack.c.bf16 %v293_v29, %v292_v28  ;;  %vm814_vm8 = vmpackc.low %vm308_vm5, %vm703_vm7  ;;  %v255_v33 = vsel %vm252_vm6, %v253_v30, %v254_v27  ;;  %v547_v34 = vld [vmem:[%s916_s3] ss:$0 sm:$0xff]  ;;  %v443_v60 = vld [vmem:[%s917_s8 + $0x18] sm:$0xff]  ;;  %s704_s3 = smov 32  }
   0x7   :  { %592 = vmatmul.mubr.msk.f32.vlgmr.msra.gmra.mrb[0].mxu1 %vm47_vm2, %v37_v10  ;;  %274 = vrot.lane.b32.xlu0 %v36_v7, %s701_s21  ;;  %v270_v18 = vsel %vm782_vm3, 0.0, %v266_v14  ;;  %vm824_vm9 = vcmp.eq.s32.totalorder %v228_v12, 0  ;;  %v258_v43 = vsel %vm252_vm6, 0.0, %v253_v30  ;;  %vm286_vm10 = vcmask 31744   ;;  %v440_v56 = vld [vmem:[%s917_s8] sm:$0xff]  ;;  %v445_v63 = vld [vmem:[%s917_s8 + $0x28] sm:$0xff] }
   0x8   :  { %602 = vmatprep.mubr.msk.f32.mxu1 %vm699_vm0, %v700_v3  ;;  %280 = vrot.lane.b32.xlu1 %v270_v18, %s702_s0  ;;  %vm790_vm4 = vcmp.eq.s32.totalorder %v235_v16, 7  ;;  %v259_v44 = vsel %vm824_vm9, 0.0, %v258_v43  ;;  %vm831_vm11 = vcmp.eq.s32.totalorder %v235_v16, 0  ;;  %vm289_vm12 = vcmask 64512   ;;  %v444_v62 = vld [vmem:[%s917_s8 + $0x20] sm:$0xff]  ;;  %v446_v1 = vld [vmem:[%s917_s8 + $0x30] sm:$0xff] }
   0x9   :  { %v271_v20 = vsel %vm790_vm4, 0.0, %v269_v17  ;;  %644 = vmatpush3.bf16.msra.mxu1 %v643_v23  ;;  %v260_v49 = vsel %vm831_vm11, 0.0, %v255_v33  ;;  %vm139_vm13 = vcmask 261120   ;;  %vm301_vm14 = vcmask 97280   ;;  %v447_v2 = vld [vmem:[%s917_s8 + $0x38] sm:$0xff]  ;;  %v448_v4 = vld [vmem:[%s917_s8 + $0x40] sm:$0xff] }
   0xa   :  { %645 = vmatprep.subr.bf16.mxu1 %v698_v0  ;;  %v654_v59 = vpack.c.bf16 %v441_v57, %v440_v56  ;;  %v658_v61 = vpack.c.bf16 %v443_v60, %v442_v58  ;;  %v662_v0 = vpack.c.bf16 %v445_v63, %v444_v62  ;;  %v666_v3 = vpack.c.bf16 %v447_v2, %v446_v1  ;;  %v449_v5 = vld [vmem:[%s917_s8 + $0x48] sm:$0xff]  ;;  %v550_v7 = vld [vmem:[%s918_s5] ss:$0 sm:$0xff]  ;;  %v450_v30 = vld [vmem:[%s917_s8 + $0x50] sm:$0xff] }
   0xb   :  { %v670_v6 = vpack.c.bf16 %v449_v5, %v448_v4  ;;  %v219_v11 = vsub.s32 1, %v774_v9  ;;  %v215_v13 = vsub.s32 0, %v774_v9  ;;  %v552_v14 = vld [vmem:[%s919_s7] ss:$0 sm:$0xff]  ;;  %vm437_vm15 = vcmask 523264  }
   0xc   :  { %282 = vrot.lane.b32.xlu1 %v271_v20, %s702_s0  ;;  %655 = vmatprep.subr.bf16.mxu0 %v654_v59  ;;  %vm459_vm0 = vcmask 785408   ;;  %v558_v57 = vld [vmem:[%s920_s9] ss:$0 sm:$0xff] }
   0xd   :  { %647 = vmatpush3.bf16.msra.mxu1 %v646_v26  ;;  %657 = vmatpush3.bf16.msra.mxu0 %v654_v59 }
   0xe   :  { %650 = vmatprep.subr.msk.bf16.mxu1 %vm814_vm8, %v648_v31  ;;  %659 = vmatprep.subr.bf16.mxu0 %v658_v61 }
  0x11   :  { %661 = vmatpush3.bf16.msra.mxu0 %v658_v61 }
  0x12   :  { %663 = vmatprep.subr.bf16.mxu0 %v662_v0 }
  0x15   :  { %665 = vmatpush3.bf16.msra.mxu0 %v662_v0 }
  0x16   :  { %667 = vmatprep.subr.bf16.mxu0 %v666_v3 }
  0x19   :  { %669 = vmatpush3.bf16.msra.mxu0 %v666_v3 }
  0x1a   :  { %671 = vmatprep.subr.bf16.mxu0 %v670_v6 }
  0x1d   :  { %673 = vmatpush3.bf16.msra.mxu0 %v670_v6 }
  0x75   :  { %v273_v42 = vpop.permute.xlu0 %272 }
  0x76   :  { %v287_v47 = vsel %vm286_vm10, %v259_v44, %v273_v42 }
  0x79   :  { %v275_v48 = vpop.permute.xlu0 %274 }
  0x7a   :  { %v281_v45 = vpop.permute.xlu1 %280  ;;  %v288_v53 = vsel %vm286_vm10, %v260_v49, %v275_v48 }
  0x7b   :  { %v290_v52 = vsel %vm289_vm12, %v287_v47, %v281_v45 }
  0x7e   :  { %v283_v54 = vpop.permute.xlu1 %282 }
  0x7f   :  { %v291_v55 = vsel %vm289_vm12, %v288_v53, %v283_v54 }
  0xda   :  { %v117_v35 = vpop.f32.mrb[0].mxu1 }
  0xdb   :  { %v118_v36 = vadd.f32 %v547_v34, %v117_v35  ;;  %v593_v37 = vpop.f32.mrb[1].mxu1 }
  0xdd   :  { %v549_v38 = vmul.f32 -1.442695, %v118_v36 }
  0xdf   :  { %686 = vpow2.f32 %v549_v38 }
  0xe9   :  { %v687_v39 = vpop.eup %686 }
  0xea   :  { %v124_v40 = vadd.f32 1.0, %v687_v39 }
  0xec   :  { %688 = vrcp.f32 %v124_v40 }
  0xf6   :  { %v689_v50 = vpop.eup %688 }
  0xf7   :  { %v127_v51 = vmul.f32 %v689_v50, %v118_v36 }
  0xf9   :  { %603 = vmatmul.mubr.msk.f32.vlgmr.msra.gmra.mrb[2].mxu1 %vm139_vm13, %v127_v51 }
  0xfa   :  { %653 = vmatpush3.bf16.msk.msra.mxu1 %vm814_vm8, %v648_v31  ;;  %609 = vmatprep.mubr.msk.f32.mxu1 %vm301_vm14, %v290_v52  ;;  %v451_v31 = vld [vmem:[%s917_s8 + $0x58] sm:$0xff]  ;;  %s705_s8 = smov 64  }
  0xfb   :  { %v674_v32 = vpack.c.bf16 %v451_v31, %v450_v30 }
  0xfd   :  { %610 = vmatmul.mubr.msk.f32.vlgmr.msra.gmra.mrb[4].mxu1 %vm301_vm14, %v291_v55  ;;  %675 = vmatprep.subr.bf16.mxu0 %v674_v32 }
  0xfe   :  { %677 = vmatpush3.bf16.msra.mxu0 %v674_v32 }
 0x1cc   :  { %v209_v8 = vpop.f32.mrb[2].mxu1 }
 0x1cd   :  { %v210_v10 = vadd.f32 %v550_v7, %v209_v8  ;;  %v604_v12 = vpop.f32.mrb[3].mxu1 }
 0x1cf   :  { %v220_v17 = vrot.slane %v210_v10, %v219_v11  ;;  %v216_v21 = vrot.slane %v210_v10, %v215_v13 }
 0x1d0   :  { %v611_v16 = vpop.f32.mrb[4].mxu1 }
 0x1d1   :  { %v384_v18 = vadd.f32 %v611_v16, %v552_v14  ;;  %v378_v20 = vpop.f32.mrb[5].mxu1 }
 0x1d2   :  { %v379_v22 = vadd.f32 %v552_v14, %v378_v20 }
 0x1d3   :  { %v388_v23 = vadd.f32 %v384_v18, %v220_v17 }
 0x1d4   :  { %v387_v24 = vadd.f32 %v379_v22, %v216_v21 }
 0x1d5   :  { %v557_v25 = vmul.f32 -1.442695, %v388_v23 }
 0x1d6   :  { %v556_v26 = vmul.f32 -1.442695, %v387_v24 }
 0x1d7   :  { %690 = vpow2.f32 %v557_v25 }
 0x1d8   :  { %692 = vpow2.f32 %v556_v26 }
 0x1e1   :  { %v691_v27 = vpop.eup %690 }
 0x1e2   :  { %v693_v28 = vpop.eup %692  ;;  %v396_v29 = vadd.f32 1.0, %v691_v27 }
 0x1e3   :  { %v395_v9 = vadd.f32 1.0, %v693_v28 }
 0x1e4   :  { %694 = vrcp.f32 %v396_v29 }
 0x1e5   :  { %696 = vrcp.f32 %v395_v9 }
 0x1ee   :  { %v695_v33 = vpop.eup %694 }
 0x1ef   :  { %v697_v34 = vpop.eup %696  ;;  %v402_v35 = vmul.f32 %v695_v33, %v388_v23 }
 0x1f0   :  { %v401_v36 = vmul.f32 %v697_v34, %v387_v24 }
 0x1f1   :  { %423 = vrot.lane.b32.xlu1 %v402_v35, %s704_s3  ;;  %v406_v37 = vrot.slane %v402_v35, 7  ;;  %v414_v38 = vrot.slane %v402_v35, 1 }
 0x1f2   :  { %421 = vrot.lane.b32.xlu0 %v401_v36, %s704_s3  ;;  %v405_v39 = vrot.slane %v401_v36, 7  ;;  %v413_v40 = vrot.slane %v401_v36, 1 }
 0x1f3   :  { %v418_v42 = vsel %vm263_vm1, %v414_v38, 0.0 }
 0x1f4   :  { %v420_v43 = vsel %vm790_vm4, 0.0, %v418_v42  ;;  %v415_v44 = vsel %vm263_vm1, %v413_v40, %v414_v38  ;;  %v407_v45 = vsel %vm252_vm6, %v405_v39, %v406_v37  ;;  %v410_v50 = vsel %vm252_vm6, 0.0, %v405_v39 }
 0x1f5   :  { %431 = vrot.lane.b32.xlu1 %v420_v43, %s705_s8  ;;  %v419_v47 = vsel %vm782_vm3, 0.0, %v415_v44  ;;  %v411_v51 = vsel %vm824_vm9, 0.0, %v410_v50  ;;  %v412_v52 = vsel %vm831_vm11, 0.0, %v407_v45 }
 0x1f6   :  { %429 = vrot.lane.b32.xlu0 %v419_v47, %s705_s8 }
 0x263   :  { %v424_v48 = vpop.permute.xlu1 %423 }
 0x264   :  { %v422_v49 = vpop.permute.xlu0 %421  ;;  %v436_v15 = vsel %vm139_vm13, %v412_v52, %v424_v48 }
 0x265   :  { %v435_v53 = vsel %vm139_vm13, %v411_v51, %v422_v49 }
 0x267   :  { %v432_v19 = vpop.permute.xlu1 %431 }
 0x268   :  { %v430_v54 = vpop.permute.xlu0 %429  ;;  %v439_v56 = vsel %vm437_vm15, %v436_v15, %v432_v19 }
 0x269   :  { %v438_v55 = vsel %vm437_vm15, %v435_v53, %v430_v54 }
 0x26a   :  { %636 = vmatprep.mubr.msk.f32.mxu0 %vm459_vm0, %v438_v55 }
 0x26b   :  { %637 = vmatmul.mubr.msk.f32.vlgmr.msra.gmra.mrb[0].mxu0 %vm459_vm0, %v439_v56 }
 0x33e   :  { %v638_v41 = vpop.f32.mrb[0].mxu0 }
 0x33f   :  { %v538_v58 = vadd.f32 %v638_v41, %v558_v57  ;;  %v532_v59 = vpop.f32.mrb[1].mxu0 }
 0x340   :  { %v533_v60 = vadd.f32 %v558_v57, %v532_v59 }
 0x341   :  { %542 = vst.msk [vmem:[%s921_s10 + $0x8] sm:$0xff] %vm286_vm10, %v538_v58 }
 0x342   :  { %541 = vst.msk [vmem:[%s921_s10] sm:$0xff] %vm286_vm10, %v533_v60 }

</bundles_post_ra>
